<compile_context>
chip_gen: v7x
topology: tpu7x:2x2x1
jax: 0.10.0
libtpu: 0.0.40
codegen_flags: <defaults>
</compile_context>

<pallas_src>
import jax
import jax.numpy as jnp
import numpy as np
from jax.experimental import pallas as pl
from jax.experimental.pallas import tpu as pltpu


def _interaction_kernel(s_ref, t_ref, o_ref):
    """Circular convolution over the padded feature dim, fully in VMEM.

    s_ref: (Bt, Ds, N, L)   s_ref[b, k, n', l]     = s[b, n', l, k]       (unpadded)
    t_ref: (Bt, N, M)       t_ref[b, n, d*L + l]   = t_pad[b, n, l, d]    (M = D*L)
    o_ref: (Bt, N*N, M)     o_ref[b, i*N+n, d*L+l] = sum_k s[b,(n-i)%N,l,k]
                                                           * t_pad[b,n,l,(d-k)%D]
                          = real(IFFT(roll(FFT(s_pad),i,dim=1) * FFT(t_pad)))[...,d]
    """
    _, Ds, N, L = s_ref.shape
    M = t_ref.shape[-1]
    D = M // L

    s_all = s_ref[...]                    # (Bt, Ds, N, L)
    t_full = t_ref[...]                   # (Bt, N, M)

    # d-broadcast of s along the lane axis: output lane m = d*L + l has
    # m % L == l, so tiling the L source lanes D times is exactly the
    # broadcast S_all[b, k, n', d*L+l] = s[b, n', l, k].
    S_all = jnp.concatenate([s_all] * D, axis=-1)          # (Bt, Ds, N, M)

    # t_k[b, n, d*L+l] = t_pad[b, n, l, (d-k)%D]: lane roll by k*L (XLU slot),
    # hoisted out of the i loop (computed once per k, reused for every shift i).
    t_rolled = [t_full if k == 0 else pltpu.roll(t_full, shift=k * L, axis=2)
                for k in range(Ds)]

    # TODO(synk): for much larger D/Ds switch the static Python unroll to
    # lax.fori_loop(..., unroll=8) or an MXU circulant-matmul formulation;
    # at Ds=8, D=16 the VPU + XLU path below is the right one.
    blocks = []
    for i in range(N):                    # shift index of torch.roll(fs, i, dim=1)
        acc0 = None
        acc1 = None                       # two accumulators: break the serial add chain
        for k in range(Ds):               # only the Ds non-zero feature rows of s
            s_ki = S_all[:, k]            # (Bt, N, M)
            if i:
                # output row (i, n) uses s instance row (n - i) % N
                s_ki = jnp.concatenate(
                    [s_ki[:, N - i:, :], s_ki[:, :N - i, :]], axis=1)
            term = s_ki * t_rolled[k]
            if k % 2 == 0:
                acc0 = term if acc0 is None else acc0 + term
            else:
                acc1 = term if acc1 is None else acc1 + term
        block_i = acc0 if acc1 is None else acc0 + acc1     # (Bt, N, M)
        blocks.append(block_i)

    # Rows already ordered q = i*N + n -> one full, unmasked store.
    o_ref[...] = jnp.concatenate(blocks, axis=1)            # (Bt, N*N, M)


def _round_up(x, m):
    return -(-x // m) * m


def _vmem_tile_bytes(shape, itemsize=4):
    """Conservative per-array VMEM bytes once last two dims are tiled to (8,128)."""
    dims = list(shape)
    dims[-1] = _round_up(dims[-1], 128)
    if len(dims) >= 2:
        dims[-2] = _round_up(dims[-2], 8)
    return int(np.prod(dims)) * itemsize


def _pick_batch_block(B, per_batch_vmem_bytes, target_bytes=2 << 20):
    """Largest divisor of B keeping one step near target_bytes of VMEM tiles.

    Keeps >= 2 grid steps when B > 1 so dimension_semantics=("parallel",) can
    split batches across TensorCores (v7x megacore).  target_bytes=2 MiB keeps
    double-buffered blocks inside every generation's default scoped VMEM
    (v5e 16 MiB); raise it (plus vmem_limit_bytes) for bigger blocks on v6e.
    """
    cap = max(1, target_bytes // max(per_batch_vmem_bytes, 1))
    bt = max(d for d in range(1, B + 1) if B % d == 0 and d <= cap)
    if B > 1 and B // bt < 2:
        smaller = [d for d in range(1, B) if B % d == 0 and B // d >= 2]
        if smaller:
            bt = max(smaller)
    return bt


def interaction_forward(s, t, s_padding, t_padding):
    """s: (B, N, L, Ds), t: (B, N, L, Dt) float32.  Returns (B, N*N, D, L)."""
    B, N, L, Ds = s.shape
    Bq, Nq, Lq, Dt = t.shape
    assert (B, N, L) == (Bq, Nq, Lq), "module semantics require matching leading dims"
    D = Dt + t_padding
    assert Ds + s_padding == D, "paddings must make the FFT dims equal"
    M = D * L

    # Compact kernel inputs (no N-fold / D-fold expansion in HBM):
    #   s_in[b, k, n', l]   = s[b, n', l, k]          (B, Ds, N, L)
    #   t_in[b, n, d*L + l] = t_pad[b, n, l, d]       (B, N, D*L)
    # s is NOT padded: its zero feature rows are simply never visited.
    s_in = jnp.transpose(s, (0, 3, 1, 2))
    t_pad = jnp.pad(t, ((0, 0), (0, 0), (0, 0), (0, t_padding)))
    t_in = jnp.swapaxes(t_pad, 2, 3).reshape(B, N, M)

    per_batch_vmem = (_vmem_tile_bytes((Ds, N, L))
                      + _vmem_tile_bytes((N, M))
                      + _vmem_tile_bytes((N * N, M)))
    bt = _pick_batch_block(B, per_batch_vmem)
    grid = (B // bt,)

    flops = 2 * B * N * N * M * Ds
    bytes_accessed = 4 * B * (Ds * N * L + N * M + N * N * M)

    out = pl.pallas_call(
        _interaction_kernel,
        out_shape=jax.ShapeDtypeStruct((B, N * N, M), s.dtype),
        grid=grid,
        in_specs=[
            pl.BlockSpec((bt, Ds, N, L), lambda b: (b, 0, 0, 0)),
            pl.BlockSpec((bt, N, M), lambda b: (b, 0, 0)),
        ],
        out_specs=pl.BlockSpec((bt, N * N, M), lambda b: (b, 0, 0)),
        compiler_params=pltpu.CompilerParams(
            dimension_semantics=("parallel",)),
        cost_estimate=pl.CostEstimate(
            flops=flops, transcendentals=0, bytes_accessed=bytes_accessed),
    )(s_in, t_in)

    # (B, N*N, d*L + l) -> (B, N*N, D, L): contiguous split, no HBM transpose.
    return out.reshape(B, N * N, D, L)


def interaction_reference(s, t, s_padding, t_padding):
    """Pure-JAX mirror of the torch module (FFT path) for verification."""
    s_pad = jnp.pad(s, ((0, 0), (0, 0), (0, 0), (0, s_padding)))
    t_pad = jnp.pad(t, ((0, 0), (0, 0), (0, 0), (0, t_padding)))
    fs = jnp.fft.fft(s_pad, axis=-1)
    ft = jnp.fft.fft(t_pad, axis=-1)
    N = s.shape[1]
    H = [jnp.roll(fs, i, axis=1) * ft for i in range(N)]
    H = jnp.concatenate(H, axis=1)
    H = jnp.real(jnp.fft.ifft(H, axis=-1))
    return jnp.transpose(H, (0, 1, 3, 2))


if __name__ == "__main__":
    # s, t: (batch, num_instances, path_len, dim)
    B, N, L = 2, 4, 8
    Ds = Dt = 8
    s_padding = t_padding = 8      # padded feature dim D = 16; output lanes D*L = 128

    key = jax.random.PRNGKey(0)
    ks, kt = jax.random.split(key)
    s = jax.random.normal(ks, (B, N, L, Ds), dtype=jnp.float32)
    t = jax.random.normal(kt, (B, N, L, Dt), dtype=jnp.float32)

    fwd = jax.jit(interaction_forward, static_argnums=(2, 3))
    out = fwd(s, t, s_padding, t_padding)
    out = jax.block_until_ready(out)

    ref = interaction_reference(s, t, s_padding, t_padding)
    np.testing.assert_allclose(np.asarray(out), np.asarray(ref), rtol=1e-3, atol=1e-3)

    print("KERNEL_OK")
</pallas_src>

<mosaic_0001>
module attributes {stable_mosaic.version = 11 : i64} {
  func.func @_interaction_kernel(%arg0: i32, %arg1: memref<1x8x4x8xf32, #tpu.memory_space<vmem>>, %arg2: memref<1x4x128xf32, #tpu.memory_space<vmem>>, %arg3: memref<1x16x128xf32, #tpu.memory_space<vmem>>) attributes {dimension_semantics = [#tpu.dimension_semantics<parallel>], iteration_bounds = array<i64: 2>, scalar_prefetch = 0 : i64, scratch_operands = 0 : i64, tpu.core_type = #tpu.core_type<tc>, window_params = [{transform_indices = @transform_0, window_bounds = array<i64: 1, 8, 4, 8>}, {transform_indices = @transform_1, window_bounds = array<i64: 1, 4, 128>}, {transform_indices = @transform_2, window_bounds = array<i64: 1, 16, 128>}]} {
    %c0 = arith.constant 0 : index
    %c0_0 = arith.constant 0 : index
    %c0_1 = arith.constant 0 : index
    %c0_2 = arith.constant 0 : index
    %0 = vector.load %arg1[%c0, %c0_0, %c0_1, %c0_2] : memref<1x8x4x8xf32, #tpu.memory_space<vmem>>, vector<1x8x4x8xf32>
    %c0_3 = arith.constant 0 : index
    %c0_4 = arith.constant 0 : index
    %c0_5 = arith.constant 0 : index
    %1 = vector.load %arg2[%c0_3, %c0_4, %c0_5] : memref<1x4x128xf32, #tpu.memory_space<vmem>>, vector<1x4x128xf32>
    %2 = tpu.concatenate %0, %0, %0, %0, %0, %0, %0, %0, %0, %0, %0, %0, %0, %0, %0, %0 in 3 : vector<1x8x4x8xf32>, vector<1x8x4x8xf32>, vector<1x8x4x8xf32>, vector<1x8x4x8xf32>, vector<1x8x4x8xf32>, vector<1x8x4x8xf32>, vector<1x8x4x8xf32>, vector<1x8x4x8xf32>, vector<1x8x4x8xf32>, vector<1x8x4x8xf32>, vector<1x8x4x8xf32>, vector<1x8x4x8xf32>, vector<1x8x4x8xf32>, vector<1x8x4x8xf32>, vector<1x8x4x8xf32>, vector<1x8x4x8xf32> -> vector<1x8x4x128xf32>
    %c8_i32 = arith.constant 8 : i32
    %3 = tpu.dynamic_rotate %1 by %c8_i32 dim 2 : vector<1x4x128xf32>, i32 -> vector<1x4x128xf32>
    %c16_i32 = arith.constant 16 : i32
    %4 = tpu.dynamic_rotate %1 by %c16_i32 dim 2 : vector<1x4x128xf32>, i32 -> vector<1x4x128xf32>
    %c24_i32 = arith.constant 24 : i32
    %5 = tpu.dynamic_rotate %1 by %c24_i32 dim 2 : vector<1x4x128xf32>, i32 -> vector<1x4x128xf32>
    %c32_i32 = arith.constant 32 : i32
    %6 = tpu.dynamic_rotate %1 by %c32_i32 dim 2 : vector<1x4x128xf32>, i32 -> vector<1x4x128xf32>
    %c40_i32 = arith.constant 40 : i32
    %7 = tpu.dynamic_rotate %1 by %c40_i32 dim 2 : vector<1x4x128xf32>, i32 -> vector<1x4x128xf32>
    %c48_i32 = arith.constant 48 : i32
    %8 = tpu.dynamic_rotate %1 by %c48_i32 dim 2 : vector<1x4x128xf32>, i32 -> vector<1x4x128xf32>
    %c56_i32 = arith.constant 56 : i32
    %9 = tpu.dynamic_rotate %1 by %c56_i32 dim 2 : vector<1x4x128xf32>, i32 -> vector<1x4x128xf32>
    %10 = vector.extract_strided_slice %2 {offsets = [0, 0, 0, 0], sizes = [1, 1, 4, 128], strides = [1, 1, 1, 1]} : vector<1x8x4x128xf32> to vector<1x1x4x128xf32>
    %11 = vector.shape_cast %10 : vector<1x1x4x128xf32> to vector<1x4x128xf32>
    %12 = arith.mulf %11, %1 : vector<1x4x128xf32>
    %13 = vector.extract_strided_slice %2 {offsets = [0, 1, 0, 0], sizes = [1, 1, 4, 128], strides = [1, 1, 1, 1]} : vector<1x8x4x128xf32> to vector<1x1x4x128xf32>
    %14 = vector.shape_cast %13 : vector<1x1x4x128xf32> to vector<1x4x128xf32>
    %15 = arith.mulf %14, %3 : vector<1x4x128xf32>
    %16 = vector.extract_strided_slice %2 {offsets = [0, 2, 0, 0], sizes = [1, 1, 4, 128], strides = [1, 1, 1, 1]} : vector<1x8x4x128xf32> to vector<1x1x4x128xf32>
    %17 = vector.shape_cast %16 : vector<1x1x4x128xf32> to vector<1x4x128xf32>
    %18 = arith.mulf %17, %4 : vector<1x4x128xf32>
    %19 = arith.addf %12, %18 : vector<1x4x128xf32>
    %20 = vector.extract_strided_slice %2 {offsets = [0, 3, 0, 0], sizes = [1, 1, 4, 128], strides = [1, 1, 1, 1]} : vector<1x8x4x128xf32> to vector<1x1x4x128xf32>
    %21 = vector.shape_cast %20 : vector<1x1x4x128xf32> to vector<1x4x128xf32>
    %22 = arith.mulf %21, %5 : vector<1x4x128xf32>
    %23 = arith.addf %15, %22 : vector<1x4x128xf32>
    %24 = vector.extract_strided_slice %2 {offsets = [0, 4, 0, 0], sizes = [1, 1, 4, 128], strides = [1, 1, 1, 1]} : vector<1x8x4x128xf32> to vector<1x1x4x128xf32>
    %25 = vector.shape_cast %24 : vector<1x1x4x128xf32> to vector<1x4x128xf32>
    %26 = arith.mulf %25, %6 : vector<1x4x128xf32>
    %27 = arith.addf %19, %26 : vector<1x4x128xf32>
    %28 = vector.extract_strided_slice %2 {offsets = [0, 5, 0, 0], sizes = [1, 1, 4, 128], strides = [1, 1, 1, 1]} : vector<1x8x4x128xf32> to vector<1x1x4x128xf32>
    %29 = vector.shape_cast %28 : vector<1x1x4x128xf32> to vector<1x4x128xf32>
    %30 = arith.mulf %29, %7 : vector<1x4x128xf32>
    %31 = arith.addf %23, %30 : vector<1x4x128xf32>
    %32 = vector.extract_strided_slice %2 {offsets = [0, 6, 0, 0], sizes = [1, 1, 4, 128], strides = [1, 1, 1, 1]} : vector<1x8x4x128xf32> to vector<1x1x4x128xf32>
    %33 = vector.shape_cast %32 : vector<1x1x4x128xf32> to vector<1x4x128xf32>
    %34 = arith.mulf %33, %8 : vector<1x4x128xf32>
    %35 = arith.addf %27, %34 : vector<1x4x128xf32>
    %36 = vector.extract_strided_slice %2 {offsets = [0, 7, 0, 0], sizes = [1, 1, 4, 128], strides = [1, 1, 1, 1]} : vector<1x8x4x128xf32> to vector<1x1x4x128xf32>
    %37 = vector.shape_cast %36 : vector<1x1x4x128xf32> to vector<1x4x128xf32>
    %38 = arith.mulf %37, %9 : vector<1x4x128xf32>
    %39 = arith.addf %31, %38 : vector<1x4x128xf32>
    %40 = arith.addf %35, %39 : vector<1x4x128xf32>
    %41 = vector.extract_strided_slice %2 {offsets = [0, 0, 0, 0], sizes = [1, 1, 4, 128], strides = [1, 1, 1, 1]} : vector<1x8x4x128xf32> to vector<1x1x4x128xf32>
    %42 = vector.shape_cast %41 : vector<1x1x4x128xf32> to vector<1x4x128xf32>
    %43 = vector.extract_strided_slice %42 {offsets = [0, 3, 0], sizes = [1, 1, 128], strides = [1, 1, 1]} : vector<1x4x128xf32> to vector<1x1x128xf32>
    %44 = vector.extract_strided_slice %42 {offsets = [0, 0, 0], sizes = [1, 3, 128], strides = [1, 1, 1]} : vector<1x4x128xf32> to vector<1x3x128xf32>
    %45 = tpu.concatenate %43, %44 in 1 : vector<1x1x128xf32>, vector<1x3x128xf32> -> vector<1x4x128xf32>
    %46 = arith.mulf %45, %1 : vector<1x4x128xf32>
    %47 = vector.extract_strided_slice %2 {offsets = [0, 1, 0, 0], sizes = [1, 1, 4, 128], strides = [1, 1, 1, 1]} : vector<1x8x4x128xf32> to vector<1x1x4x128xf32>
    %48 = vector.shape_cast %47 : vector<1x1x4x128xf32> to vector<1x4x128xf32>
    %49 = vector.extract_strided_slice %48 {offsets = [0, 3, 0], sizes = [1, 1, 128], strides = [1, 1, 1]} : vector<1x4x128xf32> to vector<1x1x128xf32>
    %50 = vector.extract_strided_slice %48 {offsets = [0, 0, 0], sizes = [1, 3, 128], strides = [1, 1, 1]} : vector<1x4x128xf32> to vector<1x3x128xf32>
    %51 = tpu.concatenate %49, %50 in 1 : vector<1x1x128xf32>, vector<1x3x128xf32> -> vector<1x4x128xf32>
    %52 = arith.mulf %51, %3 : vector<1x4x128xf32>
    %53 = vector.extract_strided_slice %2 {offsets = [0, 2, 0, 0], sizes = [1, 1, 4, 128], strides = [1, 1, 1, 1]} : vector<1x8x4x128xf32> to vector<1x1x4x128xf32>
    %54 = vector.shape_cast %53 : vector<1x1x4x128xf32> to vector<1x4x128xf32>
    %55 = vector.extract_strided_slice %54 {offsets = [0, 3, 0], sizes = [1, 1, 128], strides = [1, 1, 1]} : vector<1x4x128xf32> to vector<1x1x128xf32>
    %56 = vector.extract_strided_slice %54 {offsets = [0, 0, 0], sizes = [1, 3, 128], strides = [1, 1, 1]} : vector<1x4x128xf32> to vector<1x3x128xf32>
    %57 = tpu.concatenate %55, %56 in 1 : vector<1x1x128xf32>, vector<1x3x128xf32> -> vector<1x4x128xf32>
    %58 = arith.mulf %57, %4 : vector<1x4x128xf32>
    %59 = arith.addf %46, %58 : vector<1x4x128xf32>
    %60 = vector.extract_strided_slice %2 {offsets = [0, 3, 0, 0], sizes = [1, 1, 4, 128], strides = [1, 1, 1, 1]} : vector<1x8x4x128xf32> to vector<1x1x4x128xf32>
    %61 = vector.shape_cast %60 : vector<1x1x4x128xf32> to vector<1x4x128xf32>
    %62 = vector.extract_strided_slice %61 {offsets = [0, 3, 0], sizes = [1, 1, 128], strides = [1, 1, 1]} : vector<1x4x128xf32> to vector<1x1x128xf32>
    %63 = vector.extract_strided_slice %61 {offsets = [0, 0, 0], sizes = [1, 3, 128], strides = [1, 1, 1]} : vector<1x4x128xf32> to vector<1x3x128xf32>
    %64 = tpu.concatenate %62, %63 in 1 : vector<1x1x128xf32>, vector<1x3x128xf32> -> vector<1x4x128xf32>
    %65 = arith.mulf %64, %5 : vector<1x4x128xf32>
    %66 = arith.addf %52, %65 : vector<1x4x128xf32>
    %67 = vector.extract_strided_slice %2 {offsets = [0, 4, 0, 0], sizes = [1, 1, 4, 128], strides = [1, 1, 1, 1]} : vector<1x8x4x128xf32> to vector<1x1x4x128xf32>
    %68 = vector.shape_cast %67 : vector<1x1x4x128xf32> to vector<1x4x128xf32>
    %69 = vector.extract_strided_slice %68 {offsets = [0, 3, 0], sizes = [1, 1, 128], strides = [1, 1, 1]} : vector<1x4x128xf32> to vector<1x1x128xf32>
    %70 = vector.extract_strided_slice %68 {offsets = [0, 0, 0], sizes = [1, 3, 128], strides = [1, 1, 1]} : vector<1x4x128xf32> to vector<1x3x128xf32>
    %71 = tpu.concatenate %69, %70 in 1 : vector<1x1x128xf32>, vector<1x3x128xf32> -> vector<1x4x128xf32>
    %72 = arith.mulf %71, %6 : vector<1x4x128xf32>
    %73 = arith.addf %59, %72 : vector<1x4x128xf32>
    %74 = vector.extract_strided_slice %2 {offsets = [0, 5, 0, 0], sizes = [1, 1, 4, 128], strides = [1, 1, 1, 1]} : vector<1x8x4x128xf32> to vector<1x1x4x128xf32>
    %75 = vector.shape_cast %74 : vector<1x1x4x128xf32> to vector<1x4x128xf32>
    %76 = vector.extract_strided_slice %75 {offsets = [0, 3, 0], sizes = [1, 1, 128], strides = [1, 1, 1]} : vector<1x4x128xf32> to vector<1x1x128xf32>
    %77 = vector.extract_strided_slice %75 {offsets = [0, 0, 0], sizes = [1, 3, 128], strides = [1, 1, 1]} : vector<1x4x128xf32> to vector<1x3x128xf32>
    %78 = tpu.concatenate %76, %77 in 1 : vector<1x1x128xf32>, vector<1x3x128xf32> -> vector<1x4x128xf32>
    %79 = arith.mulf %78, %7 : vector<1x4x128xf32>
    %80 = arith.addf %66, %79 : vector<1x4x128xf32>
    %81 = vector.extract_strided_slice %2 {offsets = [0, 6, 0, 0], sizes = [1, 1, 4, 128], strides = [1, 1, 1, 1]} : vector<1x8x4x128xf32> to vector<1x1x4x128xf32>
    %82 = vector.shape_cast %81 : vector<1x1x4x128xf32> to vector<1x4x128xf32>
    %83 = vector.extract_strided_slice %82 {offsets = [0, 3, 0], sizes = [1, 1, 128], strides = [1, 1, 1]} : vector<1x4x128xf32> to vector<1x1x128xf32>
    %84 = vector.extract_strided_slice %82 {offsets = [0, 0, 0], sizes = [1, 3, 128], strides = [1, 1, 1]} : vector<1x4x128xf32> to vector<1x3x128xf32>
    %85 = tpu.concatenate %83, %84 in 1 : vector<1x1x128xf32>, vector<1x3x128xf32> -> vector<1x4x128xf32>
    %86 = arith.mulf %85, %8 : vector<1x4x128xf32>
    %87 = arith.addf %73, %86 : vector<1x4x128xf32>
    %88 = vector.extract_strided_slice %2 {offsets = [0, 7, 0, 0], sizes = [1, 1, 4, 128], strides = [1, 1, 1, 1]} : vector<1x8x4x128xf32> to vector<1x1x4x128xf32>
    %89 = vector.shape_cast %88 : vector<1x1x4x128xf32> to vector<1x4x128xf32>
    %90 = vector.extract_strided_slice %89 {offsets = [0, 3, 0], sizes = [1, 1, 128], strides = [1, 1, 1]} : vector<1x4x128xf32> to vector<1x1x128xf32>
    %91 = vector.extract_strided_slice %89 {offsets = [0, 0, 0], sizes = [1, 3, 128], strides = [1, 1, 1]} : vector<1x4x128xf32> to vector<1x3x128xf32>
    %92 = tpu.concatenate %90, %91 in 1 : vector<1x1x128xf32>, vector<1x3x128xf32> -> vector<1x4x128xf32>
    %93 = arith.mulf %92, %9 : vector<1x4x128xf32>
    %94 = arith.addf %80, %93 : vector<1x4x128xf32>
    %95 = arith.addf %87, %94 : vector<1x4x128xf32>
    %96 = vector.extract_strided_slice %2 {offsets = [0, 0, 0, 0], sizes = [1, 1, 4, 128], strides = [1, 1, 1, 1]} : vector<1x8x4x128xf32> to vector<1x1x4x128xf32>
    %97 = vector.shape_cast %96 : vector<1x1x4x128xf32> to vector<1x4x128xf32>
    %98 = vector.extract_strided_slice %97 {offsets = [0, 2, 0], sizes = [1, 2, 128], strides = [1, 1, 1]} : vector<1x4x128xf32> to vector<1x2x128xf32>
    %99 = vector.extract_strided_slice %97 {offsets = [0, 0, 0], sizes = [1, 2, 128], strides = [1, 1, 1]} : vector<1x4x128xf32> to vector<1x2x128xf32>
    %100 = tpu.concatenate %98, %99 in 1 : vector<1x2x128xf32>, vector<1x2x128xf32> -> vector<1x4x128xf32>
    %101 = arith.mulf %100, %1 : vector<1x4x128xf32>
    %102 = vector.extract_strided_slice %2 {offsets = [0, 1, 0, 0], sizes = [1, 1, 4, 128], strides = [1, 1, 1, 1]} : vector<1x8x4x128xf32> to vector<1x1x4x128xf32>
    %103 = vector.shape_cast %102 : vector<1x1x4x128xf32> to vector<1x4x128xf32>
    %104 = vector.extract_strided_slice %103 {offsets = [0, 2, 0], sizes = [1, 2, 128], strides = [1, 1, 1]} : vector<1x4x128xf32> to vector<1x2x128xf32>
    %105 = vector.extract_strided_slice %103 {offsets = [0, 0, 0], sizes = [1, 2, 128], strides = [1, 1, 1]} : vector<1x4x128xf32> to vector<1x2x128xf32>
    %106 = tpu.concatenate %104, %105 in 1 : vector<1x2x128xf32>, vector<1x2x128xf32> -> vector<1x4x128xf32>
    %107 = arith.mulf %106, %3 : vector<1x4x128xf32>
    %108 = vector.extract_strided_slice %2 {offsets = [0, 2, 0, 0], sizes = [1, 1, 4, 128], strides = [1, 1, 1, 1]} : vector<1x8x4x128xf32> to vector<1x1x4x128xf32>
    %109 = vector.shape_cast %108 : vector<1x1x4x128xf32> to vector<1x4x128xf32>
    %110 = vector.extract_strided_slice %109 {offsets = [0, 2, 0], sizes = [1, 2, 128], strides = [1, 1, 1]} : vector<1x4x128xf32> to vector<1x2x128xf32>
    %111 = vector.extract_strided_slice %109 {offsets = [0, 0, 0], sizes = [1, 2, 128], strides = [1, 1, 1]} : vector<1x4x128xf32> to vector<1x2x128xf32>
    %112 = tpu.concatenate %110, %111 in 1 : vector<1x2x128xf32>, vector<1x2x128xf32> -> vector<1x4x128xf32>
    %113 = arith.mulf %112, %4 : vector<1x4x128xf32>
    %114 = arith.addf %101, %113 : vector<1x4x128xf32>
    %115 = vector.extract_strided_slice %2 {offsets = [0, 3, 0, 0], sizes = [1, 1, 4, 128], strides = [1, 1, 1, 1]} : vector<1x8x4x128xf32> to vector<1x1x4x128xf32>
    %116 = vector.shape_cast %115 : vector<1x1x4x128xf32> to vector<1x4x128xf32>
    %117 = vector.extract_strided_slice %116 {offsets = [0, 2, 0], sizes = [1, 2, 128], strides = [1, 1, 1]} : vector<1x4x128xf32> to vector<1x2x128xf32>
    %118 = vector.extract_strided_slice %116 {offsets = [0, 0, 0], sizes = [1, 2, 128], strides = [1, 1, 1]} : vector<1x4x128xf32> to vector<1x2x128xf32>
    %119 = tpu.concatenate %117, %118 in 1 : vector<1x2x128xf32>, vector<1x2x128xf32> -> vector<1x4x128xf32>
    %120 = arith.mulf %119, %5 : vector<1x4x128xf32>
    %121 = arith.addf %107, %120 : vector<1x4x128xf32>
    %122 = vector.extract_strided_slice %2 {offsets = [0, 4, 0, 0], sizes = [1, 1, 4, 128], strides = [1, 1, 1, 1]} : vector<1x8x4x128xf32> to vector<1x1x4x128xf32>
    %123 = vector.shape_cast %122 : vector<1x1x4x128xf32> to vector<1x4x128xf32>
    %124 = vector.extract_strided_slice %123 {offsets = [0, 2, 0], sizes = [1, 2, 128], strides = [1, 1, 1]} : vector<1x4x128xf32> to vector<1x2x128xf32>
    %125 = vector.extract_strided_slice %123 {offsets = [0, 0, 0], sizes = [1, 2, 128], strides = [1, 1, 1]} : vector<1x4x128xf32> to vector<1x2x128xf32>
    %126 = tpu.concatenate %124, %125 in 1 : vector<1x2x128xf32>, vector<1x2x128xf32> -> vector<1x4x128xf32>
    %127 = arith.mulf %126, %6 : vector<1x4x128xf32>
    %128 = arith.addf %114, %127 : vector<1x4x128xf32>
    %129 = vector.extract_strided_slice %2 {offsets = [0, 5, 0, 0], sizes = [1, 1, 4, 128], strides = [1, 1, 1, 1]} : vector<1x8x4x128xf32> to vector<1x1x4x128xf32>
    %130 = vector.shape_cast %129 : vector<1x1x4x128xf32> to vector<1x4x128xf32>
    %131 = vector.extract_strided_slice %130 {offsets = [0, 2, 0], sizes = [1, 2, 128], strides = [1, 1, 1]} : vector<1x4x128xf32> to vector<1x2x128xf32>
    %132 = vector.extract_strided_slice %130 {offsets = [0, 0, 0], sizes = [1, 2, 128], strides = [1, 1, 1]} : vector<1x4x128xf32> to vector<1x2x128xf32>
    %133 = tpu.concatenate %131, %132 in 1 : vector<1x2x128xf32>, vector<1x2x128xf32> -> vector<1x4x128xf32>
    %134 = arith.mulf %133, %7 : vector<1x4x128xf32>
    %135 = arith.addf %121, %134 : vector<1x4x128xf32>
    %136 = vector.extract_strided_slice %2 {offsets = [0, 6, 0, 0], sizes = [1, 1, 4, 128], strides = [1, 1, 1, 1]} : vector<1x8x4x128xf32> to vector<1x1x4x128xf32>
    %137 = vector.shape_cast %136 : vector<1x1x4x128xf32> to vector<1x4x128xf32>
    %138 = vector.extract_strided_slice %137 {offsets = [0, 2, 0], sizes = [1, 2, 128], strides = [1, 1, 1]} : vector<1x4x128xf32> to vector<1x2x128xf32>
    %139 = vector.extract_strided_slice %137 {offsets = [0, 0, 0], sizes = [1, 2, 128], strides = [1, 1, 1]} : vector<1x4x128xf32> to vector<1x2x128xf32>
    %140 = tpu.concatenate %138, %139 in 1 : vector<1x2x128xf32>, vector<1x2x128xf32> -> vector<1x4x128xf32>
    %141 = arith.mulf %140, %8 : vector<1x4x128xf32>
    %142 = arith.addf %128, %141 : vector<1x4x128xf32>
    %143 = vector.extract_strided_slice %2 {offsets = [0, 7, 0, 0], sizes = [1, 1, 4, 128], strides = [1, 1, 1, 1]} : vector<1x8x4x128xf32> to vector<1x1x4x128xf32>
    %144 = vector.shape_cast %143 : vector<1x1x4x128xf32> to vector<1x4x128xf32>
    %145 = vector.extract_strided_slice %144 {offsets = [0, 2, 0], sizes = [1, 2, 128], strides = [1, 1, 1]} : vector<1x4x128xf32> to vector<1x2x128xf32>
    %146 = vector.extract_strided_slice %144 {offsets = [0, 0, 0], sizes = [1, 2, 128], strides = [1, 1, 1]} : vector<1x4x128xf32> to vector<1x2x128xf32>
    %147 = tpu.concatenate %145, %146 in 1 : vector<1x2x128xf32>, vector<1x2x128xf32> -> vector<1x4x128xf32>
    %148 = arith.mulf %147, %9 : vector<1x4x128xf32>
    %149 = arith.addf %135, %148 : vector<1x4x128xf32>
    %150 = arith.addf %142, %149 : vector<1x4x128xf32>
    %151 = vector.extract_strided_slice %2 {offsets = [0, 0, 0, 0], sizes = [1, 1, 4, 128], strides = [1, 1, 1, 1]} : vector<1x8x4x128xf32> to vector<1x1x4x128xf32>
    %152 = vector.shape_cast %151 : vector<1x1x4x128xf32> to vector<1x4x128xf32>
    %153 = vector.extract_strided_slice %152 {offsets = [0, 1, 0], sizes = [1, 3, 128], strides = [1, 1, 1]} : vector<1x4x128xf32> to vector<1x3x128xf32>
    %154 = vector.extract_strided_slice %152 {offsets = [0, 0, 0], sizes = [1, 1, 128], strides = [1, 1, 1]} : vector<1x4x128xf32> to vector<1x1x128xf32>
    %155 = tpu.concatenate %153, %154 in 1 : vector<1x3x128xf32>, vector<1x1x128xf32> -> vector<1x4x128xf32>
    %156 = arith.mulf %155, %1 : vector<1x4x128xf32>
    %157 = vector.extract_strided_slice %2 {offsets = [0, 1, 0, 0], sizes = [1, 1, 4, 128], strides = [1, 1, 1, 1]} : vector<1x8x4x128xf32> to vector<1x1x4x128xf32>
    %158 = vector.shape_cast %157 : vector<1x1x4x128xf32> to vector<1x4x128xf32>
    %159 = vector.extract_strided_slice %158 {offsets = [0, 1, 0], sizes = [1, 3, 128], strides = [1, 1, 1]} : vector<1x4x128xf32> to vector<1x3x128xf32>
    %160 = vector.extract_strided_slice %158 {offsets = [0, 0, 0], sizes = [1, 1, 128], strides = [1, 1, 1]} : vector<1x4x128xf32> to vector<1x1x128xf32>
    %161 = tpu.concatenate %159, %160 in 1 : vector<1x3x128xf32>, vector<1x1x128xf32> -> vector<1x4x128xf32>
    %162 = arith.mulf %161, %3 : vector<1x4x128xf32>
    %163 = vector.extract_strided_slice %2 {offsets = [0, 2, 0, 0], sizes = [1, 1, 4, 128], strides = [1, 1, 1, 1]} : vector<1x8x4x128xf32> to vector<1x1x4x128xf32>
    %164 = vector.shape_cast %163 : vector<1x1x4x128xf32> to vector<1x4x128xf32>
    %165 = vector.extract_strided_slice %164 {offsets = [0, 1, 0], sizes = [1, 3, 128], strides = [1, 1, 1]} : vector<1x4x128xf32> to vector<1x3x128xf32>
    %166 = vector.extract_strided_slice %164 {offsets = [0, 0, 0], sizes = [1, 1, 128], strides = [1, 1, 1]} : vector<1x4x128xf32> to vector<1x1x128xf32>
    %167 = tpu.concatenate %165, %166 in 1 : vector<1x3x128xf32>, vector<1x1x128xf32> -> vector<1x4x128xf32>
    %168 = arith.mulf %167, %4 : vector<1x4x128xf32>
    %169 = arith.addf %156, %168 : vector<1x4x128xf32>
    %170 = vector.extract_strided_slice %2 {offsets = [0, 3, 0, 0], sizes = [1, 1, 4, 128], strides = [1, 1, 1, 1]} : vector<1x8x4x128xf32> to vector<1x1x4x128xf32>
    %171 = vector.shape_cast %170 : vector<1x1x4x128xf32> to vector<1x4x128xf32>
    %172 = vector.extract_strided_slice %171 {offsets = [0, 1, 0], sizes = [1, 3, 128], strides = [1, 1, 1]} : vector<1x4x128xf32> to vector<1x3x128xf32>
    %173 = vector.extract_strided_slice %171 {offsets = [0, 0, 0], sizes = [1, 1, 128], strides = [1, 1, 1]} : vector<1x4x128xf32> to vector<1x1x128xf32>
    %174 = tpu.concatenate %172, %173 in 1 : vector<1x3x128xf32>, vector<1x1x128xf32> -> vector<1x4x128xf32>
    %175 = arith.mulf %174, %5 : vector<1x4x128xf32>
    %176 = arith.addf %162, %175 : vector<1x4x128xf32>
    %177 = vector.extract_strided_slice %2 {offsets = [0, 4, 0, 0], sizes = [1, 1, 4, 128], strides = [1, 1, 1, 1]} : vector<1x8x4x128xf32> to vector<1x1x4x128xf32>
    %178 = vector.shape_cast %177 : vector<1x1x4x128xf32> to vector<1x4x128xf32>
    %179 = vector.extract_strided_slice %178 {offsets = [0, 1, 0], sizes = [1, 3, 128], strides = [1, 1, 1]} : vector<1x4x128xf32> to vector<1x3x128xf32>
    %180 = vector.extract_strided_slice %178 {offsets = [0, 0, 0], sizes = [1, 1, 128], strides = [1, 1, 1]} : vector<1x4x128xf32> to vector<1x1x128xf32>
    %181 = tpu.concatenate %179, %180 in 1 : vector<1x3x128xf32>, vector<1x1x128xf32> -> vector<1x4x128xf32>
    %182 = arith.mulf %181, %6 : vector<1x4x128xf32>
    %183 = arith.addf %169, %182 : vector<1x4x128xf32>
    %184 = vector.extract_strided_slice %2 {offsets = [0, 5, 0, 0], sizes = [1, 1, 4, 128], strides = [1, 1, 1, 1]} : vector<1x8x4x128xf32> to vector<1x1x4x128xf32>
    %185 = vector.shape_cast %184 : vector<1x1x4x128xf32> to vector<1x4x128xf32>
    %186 = vector.extract_strided_slice %185 {offsets = [0, 1, 0], sizes = [1, 3, 128], strides = [1, 1, 1]} : vector<1x4x128xf32> to vector<1x3x128xf32>
    %187 = vector.extract_strided_slice %185 {offsets = [0, 0, 0], sizes = [1, 1, 128], strides = [1, 1, 1]} : vector<1x4x128xf32> to vector<1x1x128xf32>
    %188 = tpu.concatenate %186, %187 in 1 : vector<1x3x128xf32>, vector<1x1x128xf32> -> vector<1x4x128xf32>
    %189 = arith.mulf %188, %7 : vector<1x4x128xf32>
    %190 = arith.addf %176, %189 : vector<1x4x128xf32>
    %191 = vector.extract_strided_slice %2 {offsets = [0, 6, 0, 0], sizes = [1, 1, 4, 128], strides = [1, 1, 1, 1]} : vector<1x8x4x128xf32> to vector<1x1x4x128xf32>
    %192 = vector.shape_cast %191 : vector<1x1x4x128xf32> to vector<1x4x128xf32>
    %193 = vector.extract_strided_slice %192 {offsets = [0, 1, 0], sizes = [1, 3, 128], strides = [1, 1, 1]} : vector<1x4x128xf32> to vector<1x3x128xf32>
    %194 = vector.extract_strided_slice %192 {offsets = [0, 0, 0], sizes = [1, 1, 128], strides = [1, 1, 1]} : vector<1x4x128xf32> to vector<1x1x128xf32>
    %195 = tpu.concatenate %193, %194 in 1 : vector<1x3x128xf32>, vector<1x1x128xf32> -> vector<1x4x128xf32>
    %196 = arith.mulf %195, %8 : vector<1x4x128xf32>
    %197 = arith.addf %183, %196 : vector<1x4x128xf32>
    %198 = vector.extract_strided_slice %2 {offsets = [0, 7, 0, 0], sizes = [1, 1, 4, 128], strides = [1, 1, 1, 1]} : vector<1x8x4x128xf32> to vector<1x1x4x128xf32>
    %199 = vector.shape_cast %198 : vector<1x1x4x128xf32> to vector<1x4x128xf32>
    %200 = vector.extract_strided_slice %199 {offsets = [0, 1, 0], sizes = [1, 3, 128], strides = [1, 1, 1]} : vector<1x4x128xf32> to vector<1x3x128xf32>
    %201 = vector.extract_strided_slice %199 {offsets = [0, 0, 0], sizes = [1, 1, 128], strides = [1, 1, 1]} : vector<1x4x128xf32> to vector<1x1x128xf32>
    %202 = tpu.concatenate %200, %201 in 1 : vector<1x3x128xf32>, vector<1x1x128xf32> -> vector<1x4x128xf32>
    %203 = arith.mulf %202, %9 : vector<1x4x128xf32>
    %204 = arith.addf %190, %203 : vector<1x4x128xf32>
    %205 = arith.addf %197, %204 : vector<1x4x128xf32>
    %206 = tpu.concatenate %40, %95, %150, %205 in 1 : vector<1x4x128xf32>, vector<1x4x128xf32>, vector<1x4x128xf32>, vector<1x4x128xf32> -> vector<1x16x128xf32>
    %c0_6 = arith.constant 0 : index
    %c0_7 = arith.constant 0 : index
    %c0_8 = arith.constant 0 : index
    %207 = vector.load %arg3[%c0_6, %c0_7, %c0_8] : memref<1x16x128xf32, #tpu.memory_space<vmem>>, vector<1x16x128xf32>
    tpu.vector_store %arg3[%c0_6, %c0_7, %c0_8], %206 {strides = array<i32>} : memref<1x16x128xf32, #tpu.memory_space<vmem>>, vector<1x16x128xf32>,
    return
  }
  func.func @transform_0(%arg0: i32) -> (i32, i32, i32, i32) {
    %c0_i32 = arith.constant 0 : i32
    %c0_i32_0 = arith.constant 0 : i32
    %c0_i32_1 = arith.constant 0 : i32
    %c0_i32_2 = arith.constant 0 : i32
    return %arg0, %c0_i32, %c0_i32_0, %c0_i32_1 : i32, i32, i32, i32
  }
  func.func @transform_1(%arg0: i32) -> (i32, i32, i32) {
    %c0_i32 = arith.constant 0 : i32
    %c0_i32_0 = arith.constant 0 : i32
    %c0_i32_1 = arith.constant 0 : i32
    return %arg0, %c0_i32, %c0_i32_0 : i32, i32, i32
  }
  func.func @transform_2(%arg0: i32) -> (i32, i32, i32) {
    %c0_i32 = arith.constant 0 : i32
    %c0_i32_0 = arith.constant 0 : i32
    %c0_i32_1 = arith.constant 0 : i32
    return %arg0, %c0_i32, %c0_i32_0 : i32, i32, i32
  }
}

</mosaic_0001>

<bundles_post_ra>
// kernel: interaction_forward.1
= control target key start
LH: loop header
LB: loop body
LE: loop exit
PB: predicated region body
PF: predicated region fallthrough
CT: control target
= control target key end

     0   :  { %s1031_s9 = smov 0   ;;  %s1605_s0 = inlined_call_operand.vmem [shape: f32[2,8,4,8], index: 0, kind: input, shape index: {}]   ;;  %s1606_s1 = inlined_call_operand.vmem [shape: f32[2,4,128], index: 1, kind: input, shape index: {}]   ;;  %s1607_s2 = inlined_call_operand.vmem [shape: f32[2,16,128], index: 2, kind: output, shape index: {}]  }
   0x1 LB: > { %s956_s10 = sadd.s32 4294967295, %s999_s9   ;;  %p960_p0 = scmp.ge.s32.totalorder %s999_s9, 1  ;;  %s999_s9 = sphi %s1031_s9, %s12_s9  }
   0x2   : > { %p121_p1 = scmp.lt.s32.totalorder %s999_s9, 3 }
   0x4   : > { %p122_p2 = pnand %p960_p0, %p121_p1 }
   0x5   : > { %p147_p3 = scmp.lt.s32.totalorder (!%p122_p2), %s956_s10, 1  ;;  %s1001_s15 = smov (!%p122_p2), 8   ;;  %vm538_vm0 = vcmask (!%p122_p2), 64512   ;;  %vm547_vm1 = vcmask (!%p122_p2), 130048   ;;  %vm556_vm2 = vcmask (!%p122_p2), 195584   ;;  %vm565_vm3 = vcmask (!%p122_p2), 261120  }
   0x6   : > { %125 = sbr.rel (%p122_p2) target bundleno = 397 (0x18d), region = 28  ;;  %s1002_s16 = smov (!%p122_p2), 16   ;;  %vm574_vm4 = vcmask (!%p122_p2), 326656   ;;  %vm583_vm5 = vcmask (!%p122_p2), 392192   ;;  %vm592_vm6 = vcmask (!%p122_p2), 457728   ;;  %vm601_vm7 = vcmask (!%p122_p2), 523264  }
   0x7   : > { %s1003_s17 = smov (!%p122_p2), 24   ;;  %s1004_s18 = smov (!%p122_p2), 32   ;;  %vm610_vm8 = vcmask (!%p122_p2), 588800   ;;  %vm619_vm9 = vcmask (!%p122_p2), 654336   ;;  %vm628_vm10 = vcmask (!%p122_p2), 719872   ;;  %vm637_vm11 = vcmask (!%p122_p2), 785408  }
   0x8   : > { %s1005_s19 = smov (!%p122_p2), 40   ;;  %s1006_s20 = smov (!%p122_p2), 48   ;;  %vm646_vm12 = vcmask (!%p122_p2), 850944   ;;  %vm655_vm13 = vcmask (!%p122_p2), 916480   ;;  %vm664_vm14 = vcmask (!%p122_p2), 982016   ;;  %vm707_vm15 = vcmask (!%p122_p2), 1040384  }
   0x9   : > { %s1007_s21 = smov (!%p122_p2), 56   ;;  %s1008_s22 = smov (!%p122_p2), 64  }
   0xa   : > { %s1009_s23 = smov (!%p122_p2), 72   ;;  %s1010_s24 = smov (!%p122_p2), 80  }
   0xb   : > { %s1011_s25 = smov (!%p122_p2), 88   ;;  %s1012_s26 = smov (!%p122_p2), 96  }
   0xc   : > { %s1013_s27 = smov (!%p122_p2), 104   ;;  %s1014_s28 = smov (!%p122_p2), 112  }
   0xd   : > { %s1609_s10 = smov (!%p147_p3, %s956_s10), 1  ;;  %s1015_s29 = smov 120  }
   0xe   : > { %s968_s11 = sshll.u32 %s1609_s10, 5  ;;  %s963_s30 = sshll.u32 %s1609_s10, 2 }
   0xf   : > { %s151_s14 = scalar_lea.vmem %s1605_s0, %s968_s11  ;;  %s155_s5 = scalar_lea.vmem %s1606_s1, %s963_s30 }
  0x10   : > { %v1045_v0 = vld [vmem:[%s151_s14 + $0x8] sm:$0xf]  ;;  %v1047_v1 = vld [vmem:[%s151_s14] sm:$0xf]  ;;  %v1053_v2 = vld [vmem:[%s151_s14 + $0xc] sm:$0xf] }
  0x11   : > { %182 = vrot.lane.b32.xlu1 %v1045_v0, %s1001_s15  ;;  %178 = vrot.lane.b32.xlu0 %v1047_v1, %s1001_s15  ;;  %v1055_v3 = vld [vmem:[%s151_s14 + $0x4] sm:$0xf]  ;;  %v1061_v4 = vld [vmem:[%s151_s14 + $0x14] sm:$0xf]  ;;  %s969_s6 = sshll.u32 %s1609_s10, 4 }
  0x12   : > { %v1063_v5 = vld [vmem:[%s151_s14 + $0x10] sm:$0xf]  ;;  %v1069_v6 = vld [vmem:[%s151_s14 + $0x1c] sm:$0xf]  ;;  %v1071_v7 = vld [vmem:[%s151_s14 + $0x18] sm:$0xf]  ;;  %s160_s11 = scalar_lea.vmem %s1607_s2, %s969_s6 }
  0x15   : > { %184 = vrot.lane.b32.xlu1 %v1053_v2, %s1001_s15  ;;  %180 = vrot.lane.b32.xlu0 %v1055_v3, %s1001_s15 }
  0x19   : > { %188 = vrot.lane.b32.xlu1 %v1061_v4, %s1001_s15  ;;  %186 = vrot.lane.b32.xlu0 %v1063_v5, %s1001_s15 }
  0x1d   : > { %192 = vrot.lane.b32.xlu1 %v1069_v6, %s1001_s15  ;;  %190 = vrot.lane.b32.xlu0 %v1071_v7, %s1001_s15 }
  0x21   : > { %204 = vrot.lane.b32.xlu1 %v1055_v3, %s1002_s16  ;;  %202 = vrot.lane.b32.xlu0 %v1047_v1, %s1002_s16 }
  0x25   : > { %208 = vrot.lane.b32.xlu1 %v1053_v2, %s1002_s16  ;;  %206 = vrot.lane.b32.xlu0 %v1045_v0, %s1002_s16 }
  0x29   : > { %212 = vrot.lane.b32.xlu1 %v1061_v4, %s1002_s16  ;;  %210 = vrot.lane.b32.xlu0 %v1063_v5, %s1002_s16 }
  0x2d   : > { %216 = vrot.lane.b32.xlu1 %v1069_v6, %s1002_s16  ;;  %214 = vrot.lane.b32.xlu0 %v1071_v7, %s1002_s16 }
  0x31   : > { %228 = vrot.lane.b32.xlu1 %v1055_v3, %s1003_s17  ;;  %226 = vrot.lane.b32.xlu0 %v1047_v1, %s1003_s17 }
  0x35   : > { %232 = vrot.lane.b32.xlu1 %v1053_v2, %s1003_s17  ;;  %230 = vrot.lane.b32.xlu0 %v1045_v0, %s1003_s17 }
  0x39   : > { %236 = vrot.lane.b32.xlu1 %v1061_v4, %s1003_s17  ;;  %234 = vrot.lane.b32.xlu0 %v1063_v5, %s1003_s17 }
  0x3d   : > { %240 = vrot.lane.b32.xlu1 %v1069_v6, %s1003_s17  ;;  %238 = vrot.lane.b32.xlu0 %v1071_v7, %s1003_s17 }
  0x41   : > { %252 = vrot.lane.b32.xlu1 %v1055_v3, %s1004_s18  ;;  %250 = vrot.lane.b32.xlu0 %v1047_v1, %s1004_s18 }
  0x45   : > { %256 = vrot.lane.b32.xlu1 %v1053_v2, %s1004_s18  ;;  %254 = vrot.lane.b32.xlu0 %v1045_v0, %s1004_s18 }
  0x49   : > { %260 = vrot.lane.b32.xlu1 %v1061_v4, %s1004_s18  ;;  %258 = vrot.lane.b32.xlu0 %v1063_v5, %s1004_s18 }
  0x4d   : > { %264 = vrot.lane.b32.xlu1 %v1069_v6, %s1004_s18  ;;  %262 = vrot.lane.b32.xlu0 %v1071_v7, %s1004_s18 }
  0x51   : > { %276 = vrot.lane.b32.xlu1 %v1055_v3, %s1005_s19  ;;  %274 = vrot.lane.b32.xlu0 %v1047_v1, %s1005_s19 }
  0x55   : > { %280 = vrot.lane.b32.xlu1 %v1053_v2, %s1005_s19  ;;  %278 = vrot.lane.b32.xlu0 %v1045_v0, %s1005_s19 }
  0x59   : > { %284 = vrot.lane.b32.xlu1 %v1061_v4, %s1005_s19  ;;  %282 = vrot.lane.b32.xlu0 %v1063_v5, %s1005_s19 }
  0x5d   : > { %288 = vrot.lane.b32.xlu1 %v1069_v6, %s1005_s19  ;;  %286 = vrot.lane.b32.xlu0 %v1071_v7, %s1005_s19 }
  0x61   : > { %300 = vrot.lane.b32.xlu1 %v1055_v3, %s1006_s20  ;;  %298 = vrot.lane.b32.xlu0 %v1047_v1, %s1006_s20 }
  0x65   : > { %304 = vrot.lane.b32.xlu1 %v1053_v2, %s1006_s20  ;;  %302 = vrot.lane.b32.xlu0 %v1045_v0, %s1006_s20 }
  0x69   : > { %308 = vrot.lane.b32.xlu1 %v1061_v4, %s1006_s20  ;;  %306 = vrot.lane.b32.xlu0 %v1063_v5, %s1006_s20 }
  0x6d   : > { %312 = vrot.lane.b32.xlu1 %v1069_v6, %s1006_s20  ;;  %310 = vrot.lane.b32.xlu0 %v1071_v7, %s1006_s20 }
  0x71   : > { %324 = vrot.lane.b32.xlu1 %v1055_v3, %s1007_s21  ;;  %322 = vrot.lane.b32.xlu0 %v1047_v1, %s1007_s21 }
  0x75   : > { %328 = vrot.lane.b32.xlu1 %v1053_v2, %s1007_s21  ;;  %326 = vrot.lane.b32.xlu0 %v1045_v0, %s1007_s21 }
  0x79   : > { %332 = vrot.lane.b32.xlu1 %v1061_v4, %s1007_s21  ;;  %330 = vrot.lane.b32.xlu0 %v1063_v5, %s1007_s21 }
  0x7d   : > { %336 = vrot.lane.b32.xlu1 %v1069_v6, %s1007_s21  ;;  %334 = vrot.lane.b32.xlu0 %v1071_v7, %s1007_s21 }
  0x81   : > { %348 = vrot.lane.b32.xlu1 %v1055_v3, %s1008_s22  ;;  %346 = vrot.lane.b32.xlu0 %v1047_v1, %s1008_s22 }
  0x83   : > { %v1175_v8 = vpop.permute.xlu1 %182  ;;  %v1177_v9 = vpop.permute.xlu0 %178 }
  0x84   : > { %v539_v57 = vsel %vm538_vm0, %v1047_v1, %v1177_v9 }
  0x85   : > { %352 = vrot.lane.b32.xlu1 %v1053_v2, %s1008_s22  ;;  %350 = vrot.lane.b32.xlu0 %v1045_v0, %s1008_s22 }
  0x87   : > { %v1181_v10 = vpop.permute.xlu1 %184  ;;  %v1183_v11 = vpop.permute.xlu0 %180 }
  0x88   : > { %v540_v58 = vsel %vm538_vm0, %v1055_v3, %v1183_v11 }
  0x89   : > { %356 = vrot.lane.b32.xlu1 %v1061_v4, %s1008_s22  ;;  %354 = vrot.lane.b32.xlu0 %v1063_v5, %s1008_s22 }
  0x8b   : > { %v1187_v12 = vpop.permute.xlu1 %188  ;;  %v1189_v13 = vpop.permute.xlu0 %186 }
  0x8c   : > { %v544_v44 = vsel %vm538_vm0, %v1061_v4, %v1187_v12 }
  0x8d   : > { %360 = vrot.lane.b32.xlu1 %v1069_v6, %s1008_s22  ;;  %358 = vrot.lane.b32.xlu0 %v1071_v7, %s1008_s22 }
  0x8f   : > { %v1193_v14 = vpop.permute.xlu1 %192  ;;  %v1195_v15 = vpop.permute.xlu0 %190 }
  0x90   : > { %v546_v50 = vsel %vm538_vm0, %v1069_v6, %v1193_v14  ;;  %v545_v51 = vsel %vm538_vm0, %v1071_v7, %v1195_v15 }
  0x91   : > { %372 = vrot.lane.b32.xlu1 %v1055_v3, %s1009_s23  ;;  %370 = vrot.lane.b32.xlu0 %v1047_v1, %s1009_s23 }
  0x93   : > { %v1199_v16 = vpop.permute.xlu1 %204  ;;  %v1201_v17 = vpop.permute.xlu0 %202 }
  0x94   : > { %v549_v63 = vsel %vm547_vm1, %v540_v58, %v1199_v16  ;;  %v548_v12 = vsel %vm547_vm1, %v539_v57, %v1201_v17 }
  0x95   : > { %376 = vrot.lane.b32.xlu1 %v1053_v2, %s1009_s23  ;;  %374 = vrot.lane.b32.xlu0 %v1045_v0, %s1009_s23 }
  0x97   : > { %v1205_v18 = vpop.permute.xlu1 %208  ;;  %v1207_v19 = vpop.permute.xlu0 %206 }
  0x99   : > { %380 = vrot.lane.b32.xlu1 %v1061_v4, %s1009_s23  ;;  %378 = vrot.lane.b32.xlu0 %v1063_v5, %s1009_s23 }
  0x9b   : > { %v213_v20 = vpop.permute.xlu1 %212  ;;  %v1211_v21 = vpop.permute.xlu0 %210 }
  0x9c   : > { %v553_v45 = vsel %vm547_vm1, %v544_v44, %v213_v20  ;;  %v541_v20 = vsel %vm538_vm0, %v1045_v0, %v1175_v8 }
  0x9d   : > { %384 = vrot.lane.b32.xlu1 %v1069_v6, %s1009_s23  ;;  %382 = vrot.lane.b32.xlu0 %v1071_v7, %s1009_s23 }
  0x9f   : > { %v1215_v22 = vpop.permute.xlu1 %216  ;;  %v1217_v23 = vpop.permute.xlu0 %214 }
  0xa0   : > { %v555_v53 = vsel %vm547_vm1, %v546_v50, %v1215_v22  ;;  %v554_v54 = vsel %vm547_vm1, %v545_v51, %v1217_v23  ;;  %v542_v22 = vsel %vm538_vm0, %v1053_v2, %v1181_v10 }
  0xa1   : > { %396 = vrot.lane.b32.xlu1 %v1055_v3, %s1010_s24  ;;  %394 = vrot.lane.b32.xlu0 %v1047_v1, %s1010_s24 }
  0xa3   : > { %v1221_v24 = vpop.permute.xlu1 %228  ;;  %v1223_v25 = vpop.permute.xlu0 %226 }
  0xa4   : > { %v558_v15 = vsel %vm556_vm2, %v549_v63, %v1221_v24  ;;  %v557_v11 = vsel %vm556_vm2, %v548_v12, %v1223_v25 }
  0xa5   : > { %400 = vrot.lane.b32.xlu1 %v1053_v2, %s1010_s24  ;;  %398 = vrot.lane.b32.xlu0 %v1045_v0, %s1010_s24 }
  0xa7   : > { %v1227_v26 = vpop.permute.xlu1 %232  ;;  %v1229_v27 = vpop.permute.xlu0 %230 }
  0xa9   : > { %404 = vrot.lane.b32.xlu1 %v1061_v4, %s1010_s24  ;;  %402 = vrot.lane.b32.xlu0 %v1063_v5, %s1010_s24 }
  0xab   : > { %v237_v28 = vpop.permute.xlu1 %236  ;;  %v1233_v29 = vpop.permute.xlu0 %234 }
  0xac   : > { %v562_v46 = vsel %vm556_vm2, %v553_v45, %v237_v28 }
  0xad   : > { %408 = vrot.lane.b32.xlu1 %v1069_v6, %s1010_s24  ;;  %406 = vrot.lane.b32.xlu0 %v1071_v7, %s1010_s24 }
  0xaf   : > { %v241_v30 = vpop.permute.xlu1 %240  ;;  %v239_v31 = vpop.permute.xlu0 %238 }
  0xb0   : > { %v564_v55 = vsel %vm556_vm2, %v555_v53, %v241_v30  ;;  %v563_v56 = vsel %vm556_vm2, %v554_v54, %v239_v31  ;;  %v551_v30 = vsel %vm547_vm1, %v542_v22, %v1205_v18  ;;  %v550_v31 = vsel %vm547_vm1, %v541_v20, %v1207_v19 }
  0xb1   : > { %420 = vrot.lane.b32.xlu1 %v1055_v3, %s1011_s25  ;;  %418 = vrot.lane.b32.xlu0 %v1047_v1, %s1011_s25  ;;  %v559_v10 = vsel %vm556_vm2, %v550_v31, %v1229_v27 }
  0xb3   : > { %v253_v32 = vpop.permute.xlu1 %252  ;;  %v251_v33 = vpop.permute.xlu0 %250 }
  0xb4   : > { %v567_v16 = vsel %vm565_vm3, %v558_v15, %v253_v32  ;;  %v566_v17 = vsel %vm565_vm3, %v557_v11, %v251_v33  ;;  %v560_v33 = vsel %vm556_vm2, %v551_v30, %v1227_v26  ;;  %v543_v26 = vsel %vm538_vm0, %v1063_v5, %v1189_v13 }
  0xb5   : > { %424 = vrot.lane.b32.xlu1 %v1053_v2, %s1011_s25  ;;  %422 = vrot.lane.b32.xlu0 %v1045_v0, %s1011_s25  ;;  %vm770_vm0 = vcmask 1041408  }
  0xb7   : > { %v1241_v34 = vpop.permute.xlu1 %256  ;;  %v1243_v35 = vpop.permute.xlu0 %254 }
  0xb8   : > { %v569_v18 = vsel %vm565_vm3, %v560_v33, %v1241_v34  ;;  %v568_v19 = vsel %vm565_vm3, %v559_v10, %v1243_v35 }
  0xb9   : > { %428 = vrot.lane.b32.xlu1 %v1061_v4, %s1011_s25  ;;  %426 = vrot.lane.b32.xlu0 %v1063_v5, %s1011_s25 }
  0xbb   : > { %v261_v36 = vpop.permute.xlu1 %260  ;;  %v1247_v37 = vpop.permute.xlu0 %258 }
  0xbc   : > { %v571_v47 = vsel %vm565_vm3, %v562_v46, %v261_v36 }
  0xbd   : > { %432 = vrot.lane.b32.xlu1 %v1069_v6, %s1011_s25  ;;  %430 = vrot.lane.b32.xlu0 %v1071_v7, %s1011_s25 }
  0xbf   : > { %v265_v38 = vpop.permute.xlu1 %264  ;;  %v263_v39 = vpop.permute.xlu0 %262 }
  0xc0   : > { %v573_v59 = vsel %vm565_vm3, %v564_v55, %v265_v38  ;;  %v572_v60 = vsel %vm565_vm3, %v563_v56, %v263_v39 }
  0xc1   : > { %444 = vrot.lane.b32.xlu1 %v1055_v3, %s1012_s26  ;;  %442 = vrot.lane.b32.xlu0 %v1047_v1, %s1012_s26 }
  0xc3   : > { %v277_v40 = vpop.permute.xlu1 %276  ;;  %v275_v41 = vpop.permute.xlu0 %274 }
  0xc4   : > { %v576_v23 = vsel %vm574_vm4, %v567_v16, %v277_v40  ;;  %v575_v24 = vsel %vm574_vm4, %v566_v17, %v275_v41  ;;  %v552_v40 = vsel %vm547_vm1, %v543_v26, %v1211_v21  ;;  %v1412_v17 = vld [vmem:[%s155_s5] sm:$0xf]  ;;  %vm826_vm1 = vcmask 1042432  }
  0xc5   : > { %448 = vrot.lane.b32.xlu1 %v1053_v2, %s1012_s26  ;;  %446 = vrot.lane.b32.xlu0 %v1045_v0, %s1012_s26  ;;  %v561_v35 = vsel %vm556_vm2, %v552_v40, %v1233_v29  ;;  %vm884_vm2 = vcmask 1043456  }
  0xc6   : > { %v570_v13 = vsel %vm565_vm3, %v561_v35, %v1247_v37 }
  0xc7   : > { %v281_v42 = vpop.permute.xlu1 %280  ;;  %v279_v43 = vpop.permute.xlu0 %278 }
  0xc8   : > { %v578_v36 = vsel %vm574_vm4, %v569_v18, %v281_v42  ;;  %v577_v27 = vsel %vm574_vm4, %v568_v19, %v279_v43 }
  0xc9   : > { %468 = vrot.lane.b32.xlu1 %v1055_v3, %s1013_s27  ;;  %466 = vrot.lane.b32.xlu0 %v1047_v1, %s1013_s27 }
  0xcb   : > { %v285_v48 = vpop.permute.xlu1 %284  ;;  %v283_v49 = vpop.permute.xlu0 %282 }
  0xcc   : > { %v580_v52 = vsel %vm574_vm4, %v571_v47, %v285_v48  ;;  %v579_v42 = vsel %vm574_vm4, %v570_v13, %v283_v49 }
  0xcd   : > { %472 = vrot.lane.b32.xlu1 %v1053_v2, %s1013_s27  ;;  %470 = vrot.lane.b32.xlu0 %v1045_v0, %s1013_s27 }
  0xcf   : > { %v289_v61 = vpop.permute.xlu1 %288  ;;  %v287_v62 = vpop.permute.xlu0 %286 }
  0xd0   : > { %v582_v14 = vsel %vm574_vm4, %v573_v59, %v289_v61  ;;  %v581_v9 = vsel %vm574_vm4, %v572_v60, %v287_v62 }
  0xd1   : > { %452 = vrot.lane.b32.xlu1 %v1061_v4, %s1012_s26  ;;  %450 = vrot.lane.b32.xlu0 %v1063_v5, %s1012_s26 }
  0xd3   : > { %v301_v25 = vpop.permute.xlu1 %300  ;;  %v299_v28 = vpop.permute.xlu0 %298 }
  0xd4   : > { %v585_v32 = vsel %vm583_vm5, %v576_v23, %v301_v25  ;;  %v584_v8 = vsel %vm583_vm5, %v575_v24, %v299_v28 }
  0xd5   : > { %492 = vrot.lane.b32.xlu1 %v1055_v3, %s1014_s28  ;;  %490 = vrot.lane.b32.xlu0 %v1047_v1, %s1014_s28 }
  0xd7   : > { %v305_v38 = vpop.permute.xlu1 %304  ;;  %v303_v39 = vpop.permute.xlu0 %302 }
  0xd8   : > { %v587_v41 = vsel %vm583_vm5, %v578_v36, %v305_v38  ;;  %v586_v34 = vsel %vm583_vm5, %v577_v27, %v303_v39 }
  0xd9   : > { %496 = vrot.lane.b32.xlu1 %v1053_v2, %s1014_s28  ;;  %494 = vrot.lane.b32.xlu0 %v1045_v0, %s1014_s28 }
  0xdb   : > { %v309_v43 = vpop.permute.xlu1 %308  ;;  %v307_v21 = vpop.permute.xlu0 %306 }
  0xdc   : > { %v589_v44 = vsel %vm583_vm5, %v580_v52, %v309_v43  ;;  %v588_v45 = vsel %vm583_vm5, %v579_v42, %v307_v21 }
  0xdd   : > { %476 = vrot.lane.b32.xlu1 %v1061_v4, %s1013_s27  ;;  %474 = vrot.lane.b32.xlu0 %v1063_v5, %s1013_s27 }
  0xdf   : > { %v313_v29 = vpop.permute.xlu1 %312  ;;  %v311_v46 = vpop.permute.xlu0 %310 }
  0xe0   : > { %v591_v47 = vsel %vm583_vm5, %v582_v14, %v313_v29  ;;  %v590_v37 = vsel %vm583_vm5, %v581_v9, %v311_v46 }
  0xe1   : > { %516 = vrot.lane.b32.xlu1 %v1055_v3, %s1015_s29  ;;  %514 = vrot.lane.b32.xlu0 %v1047_v1, %s1015_s29 }
  0xe3   : > { %v325_v48 = vpop.permute.xlu1 %324  ;;  %v323_v49 = vpop.permute.xlu0 %322 }
  0xe4   : > { %v594_v50 = vsel %vm592_vm6, %v585_v32, %v325_v48  ;;  %v593_v51 = vsel %vm592_vm6, %v584_v8, %v323_v49 }
  0xe5   : > { %520 = vrot.lane.b32.xlu1 %v1053_v2, %s1015_s29  ;;  %518 = vrot.lane.b32.xlu0 %v1045_v0, %s1015_s29 }
  0xe7   : > { %v329_v52 = vpop.permute.xlu1 %328  ;;  %v327_v53 = vpop.permute.xlu0 %326 }
  0xe8   : > { %v596_v3 = vsel %vm592_vm6, %v587_v41, %v329_v52  ;;  %v595_v54 = vsel %vm592_vm6, %v586_v34, %v327_v53 }
  0xe9   : > { %456 = vrot.lane.b32.xlu1 %v1069_v6, %s1012_s26  ;;  %454 = vrot.lane.b32.xlu0 %v1071_v7, %s1012_s26 }
  0xeb   : > { %v333_v1 = vpop.permute.xlu1 %332  ;;  %v331_v55 = vpop.permute.xlu0 %330 }
  0xec   : > { %v598_v56 = vsel %vm592_vm6, %v589_v44, %v333_v1  ;;  %v597_v2 = vsel %vm592_vm6, %v588_v45, %v331_v55 }
  0xed   : > { %500 = vrot.lane.b32.xlu1 %v1061_v4, %s1014_s28  ;;  %498 = vrot.lane.b32.xlu0 %v1063_v5, %s1014_s28 }
  0xef   : > { %v337_v0 = vpop.permute.xlu1 %336  ;;  %v335_v57 = vpop.permute.xlu0 %334 }
  0xf0   : > { %v600_v58 = vsel %vm592_vm6, %v591_v47, %v337_v0  ;;  %v599_v59 = vsel %vm592_vm6, %v590_v37, %v335_v57 }
  0xf1   : > { %480 = vrot.lane.b32.xlu1 %v1069_v6, %s1013_s27  ;;  %478 = vrot.lane.b32.xlu0 %v1071_v7, %s1013_s27 }
  0xf3   : > { %v349_v60 = vpop.permute.xlu1 %348  ;;  %v347_v61 = vpop.permute.xlu0 %346 }
  0xf4   : > { %v603_v62 = vsel %vm601_vm7, %v594_v50, %v349_v60  ;;  %v602_v63 = vsel %vm601_vm7, %v593_v51, %v347_v61 }
  0xf5   : > { %524 = vrot.lane.b32.xlu1 %v1061_v4, %s1015_s29  ;;  %522 = vrot.lane.b32.xlu0 %v1063_v5, %s1015_s29 }
  0xf7   : > { %v353_v12 = vpop.permute.xlu1 %352  ;;  %v351_v14 = vpop.permute.xlu0 %350 }
  0xf8   : > { %v605_v9 = vsel %vm601_vm7, %v596_v3, %v353_v12  ;;  %v604_v15 = vsel %vm601_vm7, %v595_v54, %v351_v14 }
  0xf9   : > { %504 = vrot.lane.b32.xlu1 %v1069_v6, %s1014_s28  ;;  %502 = vrot.lane.b32.xlu0 %v1071_v7, %s1014_s28 }
  0xfb   : > { %v357_v11 = vpop.permute.xlu1 %356  ;;  %v355_v16 = vpop.permute.xlu0 %354 }
  0xfc   : > { %v607_v4 = vsel %vm601_vm7, %v598_v56, %v357_v11  ;;  %v606_v5 = vsel %vm601_vm7, %v597_v2, %v355_v16 }
  0xfd   : > { %528 = vrot.lane.b32.xlu1 %v1069_v6, %s1015_s29  ;;  %526 = vrot.lane.b32.xlu0 %v1071_v7, %s1015_s29 }
  0xff   : > { %v361_v20 = vpop.permute.xlu1 %360  ;;  %v359_v22 = vpop.permute.xlu0 %358 }
 0x100   : > { %v609_v23 = vsel %vm601_vm7, %v600_v58, %v361_v20  ;;  %v608_v24 = vsel %vm601_vm7, %v599_v59, %v359_v22 }
 0x101   : > { %675 = vrot.lane.b32.xlu1 %v1412_v17, %s1002_s16  ;;  %673 = vrot.lane.b32.xlu0 %v1412_v17, %s1001_s15 }
 0x103   : > { %v373_v25 = vpop.permute.xlu1 %372  ;;  %v371_v6 = vpop.permute.xlu0 %370 }
 0x104   : > { %v612_v28 = vsel %vm610_vm8, %v603_v62, %v373_v25  ;;  %v611_v7 = vsel %vm610_vm8, %v602_v63, %v371_v6 }
 0x105   : > { %679 = vrot.lane.b32.xlu1 %v1412_v17, %s1004_s18  ;;  %677 = vrot.lane.b32.xlu0 %v1412_v17, %s1003_s17 }
 0x107   : > { %v377_v30 = vpop.permute.xlu1 %376  ;;  %v375_v31 = vpop.permute.xlu0 %374 }
 0x108   : > { %v614_v32 = vsel %vm610_vm8, %v605_v9, %v377_v30  ;;  %v613_v8 = vsel %vm610_vm8, %v604_v15, %v375_v31 }
 0x109   : > { %683 = vrot.lane.b32.xlu1 %v1412_v17, %s1006_s20  ;;  %681 = vrot.lane.b32.xlu0 %v1412_v17, %s1005_s19 }
 0x10b   : > { %v381_v33 = vpop.permute.xlu1 %380  ;;  %v379_v10 = vpop.permute.xlu0 %378 }
 0x10c   : > { %v616_v18 = vsel %vm610_vm8, %v607_v4, %v381_v33  ;;  %v615_v19 = vsel %vm610_vm8, %v606_v5, %v379_v10 }
 0x10d   : > { %685 = vrot.lane.b32.xlu0 %v1412_v17, %s1007_s21 }
 0x10f   : > { %v385_v26 = vpop.permute.xlu1 %384  ;;  %v383_v36 = vpop.permute.xlu0 %382 }
 0x110   : > { %v618_v27 = vsel %vm610_vm8, %v609_v23, %v385_v26  ;;  %v617_v38 = vsel %vm610_vm8, %v608_v24, %v383_v36 }
 0x113   : > { %v397_v39 = vpop.permute.xlu1 %396  ;;  %v395_v40 = vpop.permute.xlu0 %394 }
 0x114   : > { %v621_v41 = vsel %vm619_vm9, %v612_v28, %v397_v39  ;;  %v620_v34 = vsel %vm619_vm9, %v611_v7, %v395_v40 }
 0x117   : > { %v401_v35 = vpop.permute.xlu1 %400  ;;  %v399_v13 = vpop.permute.xlu0 %398 }
 0x118   : > { %v623_v42 = vsel %vm619_vm9, %v614_v32, %v401_v35  ;;  %v622_v43 = vsel %vm619_vm9, %v613_v8, %v399_v13 }
 0x11b   : > { %v405_v21 = vpop.permute.xlu1 %404  ;;  %v403_v44 = vpop.permute.xlu0 %402 }
 0x11c   : > { %v625_v45 = vsel %vm619_vm9, %v616_v18, %v405_v21  ;;  %v624_v29 = vsel %vm619_vm9, %v615_v19, %v403_v44 }
 0x11f   : > { %v409_v46 = vpop.permute.xlu1 %408  ;;  %v407_v47 = vpop.permute.xlu0 %406 }
 0x120   : > { %v627_v37 = vsel %vm619_vm9, %v618_v27, %v409_v46  ;;  %v626_v48 = vsel %vm619_vm9, %v617_v38, %v407_v47 }
 0x123   : > { %v421_v49 = vpop.permute.xlu1 %420  ;;  %v419_v50 = vpop.permute.xlu0 %418 }
 0x124   : > { %v630_v51 = vsel %vm628_vm10, %v621_v41, %v421_v49  ;;  %v629_v52 = vsel %vm628_vm10, %v620_v34, %v419_v50 }
 0x127   : > { %v425_v53 = vpop.permute.xlu1 %424  ;;  %v423_v3 = vpop.permute.xlu0 %422 }
 0x128   : > { %v632_v54 = vsel %vm628_vm10, %v623_v42, %v425_v53  ;;  %v631_v1 = vsel %vm628_vm10, %v622_v43, %v423_v3 }
 0x12b   : > { %v429_v55 = vpop.permute.xlu1 %428  ;;  %v427_v56 = vpop.permute.xlu0 %426 }
 0x12c   : > { %v634_v2 = vsel %vm628_vm10, %v625_v45, %v429_v55  ;;  %v633_v0 = vsel %vm628_vm10, %v624_v29, %v427_v56 }
 0x12f   : > { %v433_v57 = vpop.permute.xlu1 %432  ;;  %v431_v58 = vpop.permute.xlu0 %430 }
 0x130   : > { %v1453_v59 = vsel %vm628_vm10, %v627_v37, %v433_v57  ;;  %v1456_v60 = vsel %vm628_vm10, %v626_v48, %v431_v58 }
 0x133   : > { %v445_v61 = vpop.permute.xlu1 %444  ;;  %v443_v62 = vpop.permute.xlu0 %442 }
 0x134   : > { %v638_v63 = vsel %vm637_vm11, %v629_v52, %v443_v62  ;;  %v639_v33 = vsel %vm637_vm11, %v630_v51, %v445_v61 }
 0x137   : > { %v449_v12 = vpop.permute.xlu1 %448  ;;  %v447_v14 = vpop.permute.xlu0 %446 }
 0x138   : > { %v640_v18 = vsel %vm637_vm11, %v631_v1, %v447_v14  ;;  %v641_v42 = vsel %vm637_vm11, %v632_v54, %v449_v12 }
 0x13b   : > { %v469_v9 = vpop.permute.xlu1 %468  ;;  %v467_v15 = vpop.permute.xlu0 %466 }
 0x13c   : > { %v647_v30 = vsel %vm646_vm12, %v638_v63, %v467_v15  ;;  %v648_v19 = vsel %vm646_vm12, %v639_v33, %v469_v9 }
 0x13f   : > { %v473_v11 = vpop.permute.xlu1 %472  ;;  %v471_v16 = vpop.permute.xlu0 %470 }
 0x140   : > { %v649_v26 = vsel %vm646_vm12, %v640_v18, %v471_v16  ;;  %v650_v45 = vsel %vm646_vm12, %v641_v42, %v473_v11 }
 0x143   : > { %v453_v4 = vpop.permute.xlu1 %452  ;;  %v451_v5 = vpop.permute.xlu0 %450 }
 0x144   : > { %v643_v29 = vsel %vm637_vm11, %v634_v2, %v453_v4  ;;  %v642_v46 = vsel %vm637_vm11, %v633_v0, %v451_v5 }
 0x147   : > { %v493_v20 = vpop.permute.xlu1 %492  ;;  %v491_v22 = vpop.permute.xlu0 %490 }
 0x148   : > { %v656_v8 = vsel %vm655_vm13, %v647_v30, %v491_v22  ;;  %v657_v36 = vsel %vm655_vm13, %v648_v19, %v493_v20 }
 0x14b   : > { %v497_v23 = vpop.permute.xlu1 %496  ;;  %v495_v24 = vpop.permute.xlu0 %494 }
 0x14c   : > { %v658_v35 = vsel %vm655_vm13, %v649_v26, %v495_v24  ;;  %v659_v1 = vsel %vm655_vm13, %v650_v45, %v497_v23 }
 0x14f   : > { %v477_v25 = vpop.permute.xlu1 %476  ;;  %v475_v6 = vpop.permute.xlu0 %474 }
 0x150   : > { %v652_v0 = vsel %vm646_vm12, %v643_v29, %v477_v25  ;;  %v651_v57 = vsel %vm646_vm12, %v642_v46, %v475_v6 }
 0x153   : > { %v517_v28 = vpop.permute.xlu1 %516  ;;  %v515_v7 = vpop.permute.xlu0 %514 }
 0x154   : > { %v665_v10 = vsel %vm664_vm14, %v656_v8, %v515_v7  ;;  %v1469_v13 = vsel %vm664_vm14, %v657_v36, %v517_v28 }
 0x155   : > { %v703_v39 = vrot.slane %v665_v10, 3  ;;  %v705_v40 = vrot.slane %v665_v10, 7  ;;  %v766_v41 = vrot.slane %v665_v10, 2  ;;  %v768_v34 = vrot.slane %v665_v10, 6 }
 0x156   : > { %v822_v43 = vrot.slane %v665_v10, 1  ;;  %v824_v21 = vrot.slane %v665_v10, 5  ;;  %v711_v50 = vrot.slane %v1469_v13, 3  ;;  %v713_v51 = vrot.slane %v1469_v13, 7 }
 0x157   : > { %v521_v31 = vpop.permute.xlu1 %520  ;;  %v519_v32 = vpop.permute.xlu0 %518  ;;  %v708_v48 = vsel %vm707_vm15, %v703_v39, %v705_v40  ;;  %v771_v49 = vsel %vm770_vm0, %v766_v41, %v768_v34  ;;  %v773_v62 = vrot.slane %v1469_v13, 2  ;;  %v775_v63 = vrot.slane %v1469_v13, 6 }
 0x158   : > { %v1473_v44 = vsel %vm664_vm14, %v658_v35, %v519_v32  ;;  %v827_v55 = vsel %vm826_vm1, %v822_v43, %v824_v21  ;;  %v1495_v12 = vsel %vm664_vm14, %v659_v1, %v521_v31  ;;  %v1498_v14 = vmul.f32 %v665_v10, %v1412_v17 }
 0x159   : > { %v718_v52 = vrot.slane %v1473_v44, 3  ;;  %v720_v53 = vrot.slane %v1473_v44, 7  ;;  %v779_v3 = vrot.slane %v1473_v44, 2  ;;  %v781_v54 = vrot.slane %v1473_v44, 6 }
 0x15a   : > { %v835_v56 = vrot.slane %v1473_v44, 1  ;;  %v837_v2 = vrot.slane %v1473_v44, 5  ;;  %v1501_v9 = vmul.f32 %v708_v48, %v1412_v17  ;;  %v1504_v15 = vmul.f32 %v771_v49, %v1412_v17 }
 0x15b   : > { %v457_v27 = vpop.permute.xlu1 %456  ;;  %v455_v38 = vpop.permute.xlu0 %454  ;;  %v1507_v11 = vsel %vm707_vm15, %v718_v52, %v720_v53  ;;  %v1510_v16 = vsel %vm770_vm0, %v779_v3, %v781_v54  ;;  %v1513_v4 = vmul.f32 %v827_v55, %v1412_v17  ;;  %v1516_v5 = vsel %vm707_vm15, %v711_v50, %v713_v51 }
 0x15c   : > { %v645_v20 = vsel %vm637_vm11, %v1453_v59, %v457_v27  ;;  %v644_v22 = vsel %vm637_vm11, %v1456_v60, %v455_v38  ;;  %v1523_v23 = vsel %vm826_vm1, %v835_v56, %v837_v2  ;;  %v829_v24 = vrot.slane %v1469_v13, 1 }
 0x15d   : > { %v777_v7 = vsel %vm770_vm0, %v773_v62, %v775_v63  ;;  %v831_v30 = vrot.slane %v1469_v13, 5  ;;  %v726_v31 = vrot.slane %v1495_v12, 3  ;;  %v728_v32 = vrot.slane %v1495_v12, 7 }
 0x15e   : > { %v786_v8 = vrot.slane %v1495_v12, 2  ;;  %v788_v33 = vrot.slane %v1495_v12, 6  ;;  %v842_v10 = vrot.slane %v1495_v12, 1  ;;  %v844_v18 = vrot.slane %v1495_v12, 5 }
 0x15f   : > { %v501_v47 = vpop.permute.xlu1 %500  ;;  %v499_v37 = vpop.permute.xlu0 %498  ;;  %v833_v42 = vsel %vm826_vm1, %v829_v24, %v831_v30  ;;  %v730_v43 = vsel %vm707_vm15, %v726_v31, %v728_v32 }
 0x160   : > { %v661_v25 = vsel %vm655_vm13, %v652_v0, %v501_v47  ;;  %v660_v6 = vsel %vm655_vm13, %v651_v57, %v499_v37  ;;  %v790_v29 = vsel %vm770_vm0, %v786_v8, %v788_v33  ;;  %v846_v46 = vsel %vm826_vm1, %v842_v10, %v844_v18 }
 0x163   : > { %v481_v58 = vpop.permute.xlu1 %480  ;;  %v479_v61 = vpop.permute.xlu0 %478 }
 0x164   : > { %v654_v48 = vsel %vm646_vm12, %v645_v20, %v481_v58  ;;  %v653_v49 = vsel %vm646_vm12, %v644_v22, %v479_v61 }
 0x167   : > { %v525_v17 = vpop.permute.xlu1 %524  ;;  %v523_v28 = vpop.permute.xlu0 %522 }
 0x168   : > { %v1531_v59 = vsel %vm664_vm14, %v661_v25, %v525_v17  ;;  %v1534_v60 = vsel %vm664_vm14, %v660_v6, %v523_v28 }
 0x169   : > { %v734_v19 = vrot.slane %v1534_v60, 3  ;;  %v736_v26 = vrot.slane %v1534_v60, 7  ;;  %v793_v36 = vrot.slane %v1534_v60, 2  ;;  %v795_v27 = vrot.slane %v1534_v60, 6 }
 0x16a   : > { %v849_v40 = vrot.slane %v1534_v60, 1  ;;  %v851_v41 = vrot.slane %v1534_v60, 5  ;;  %v742_v34 = vrot.slane %v1531_v59, 3  ;;  %v744_v35 = vrot.slane %v1531_v59, 7 }
 0x16b   : > { %v505_v38 = vpop.permute.xlu1 %504  ;;  %v503_v39 = vpop.permute.xlu0 %502  ;;  %v800_v21 = vrot.slane %v1531_v59, 2  ;;  %v802_v45 = vrot.slane %v1531_v59, 6  ;;  %v856_v47 = vrot.slane %v1531_v59, 1  ;;  %v858_v37 = vrot.slane %v1531_v59, 5 }
 0x16c   : > { %v738_v50 = vsel %vm707_vm15, %v734_v19, %v736_v26  ;;  %v797_v51 = vsel %vm770_vm0, %v793_v36, %v795_v27  ;;  %v663_v52 = vsel %vm655_vm13, %v654_v48, %v505_v38  ;;  %v662_v53 = vsel %vm655_vm13, %v653_v49, %v503_v39 }
 0x16d   : > { %v853_v1 = vsel %vm826_vm1, %v849_v40, %v851_v41  ;;  %v746_v55 = vsel %vm707_vm15, %v742_v34, %v744_v35  ;;  %v804_v0 = vsel %vm770_vm0, %v800_v21, %v802_v45  ;;  %v860_v57 = vsel %vm826_vm1, %v856_v47, %v858_v37 }
 0x16f   : > { %v529_v3 = vpop.permute.xlu1 %528  ;;  %v527_v54 = vpop.permute.xlu0 %526 }
 0x170   : > { %v1567_v56 = vsel %vm664_vm14, %v663_v52, %v529_v3  ;;  %v671_v2 = vsel %vm664_vm14, %v662_v53, %v527_v54 }
 0x171   : > { %v750_v58 = vrot.slane %v671_v2, 3  ;;  %v752_v61 = vrot.slane %v671_v2, 7  ;;  %v807_v62 = vrot.slane %v671_v2, 2  ;;  %v809_v63 = vrot.slane %v671_v2, 6 }
 0x172   : > { %v863_v20 = vrot.slane %v671_v2, 1  ;;  %v865_v22 = vrot.slane %v671_v2, 5  ;;  %v758_v24 = vrot.slane %v1567_v56, 3  ;;  %v760_v25 = vrot.slane %v1567_v56, 7 }
 0x173   : > { %v676_v6 = vpop.permute.xlu1 %675  ;;  %v674_v17 = vpop.permute.xlu0 %673  ;;  %v754_v28 = vsel %vm707_vm15, %v750_v58, %v752_v61  ;;  %v811_v30 = vsel %vm770_vm0, %v807_v62, %v809_v63  ;;  %v814_v31 = vrot.slane %v1567_v56, 2  ;;  %v816_v32 = vrot.slane %v1567_v56, 6 }
 0x174   : > { %v689_v8 = vmul.f32 %v676_v6, %v1473_v44  ;;  %v723_v33 = vmul.f32 %v1507_v11, %v676_v6  ;;  %v784_v10 = vmul.f32 %v1510_v16, %v676_v6  ;;  %v840_v18 = vmul.f32 %v1523_v23, %v676_v6 }
 0x175   : > { %v688_v19 = vmul.f32 %v674_v17, %v1469_v13  ;;  %v716_v26 = vmul.f32 %v1516_v5, %v674_v17  ;;  %v778_v36 = vmul.f32 %v777_v7, %v674_v17  ;;  %v834_v27 = vmul.f32 %v833_v42, %v674_v17 }
 0x176   : > { %v690_v38 = vadd.f32 %v689_v8, %v1498_v14  ;;  %v724_v39 = vadd.f32 %v723_v33, %v1501_v9  ;;  %v785_v40 = vadd.f32 %v784_v10, %v1504_v15  ;;  %v841_v44 = vadd.f32 %v840_v18, %v1513_v4 }
 0x177   : > { %v680_v41 = vpop.permute.xlu1 %679  ;;  %v678_v11 = vpop.permute.xlu0 %677  ;;  %v867_v16 = vsel %vm826_vm1, %v863_v20, %v865_v22  ;;  %v762_v23 = vsel %vm707_vm15, %v758_v24, %v760_v25  ;;  %v818_v13 = vsel %vm770_vm0, %v814_v31, %v816_v32  ;;  %v870_v5 = vrot.slane %v1567_v56, 1 }
 0x178   : > { %v693_v7 = vmul.f32 %v680_v41, %v1534_v60  ;;  %v739_v34 = vmul.f32 %v738_v50, %v680_v41  ;;  %v798_v14 = vmul.f32 %v797_v51, %v680_v41  ;;  %v854_v35 = vmul.f32 %v853_v1, %v680_v41 }
 0x179   : > { %v691_v9 = vmul.f32 %v678_v11, %v1495_v12  ;;  %v731_v15 = vmul.f32 %v730_v43, %v678_v11  ;;  %v791_v42 = vmul.f32 %v790_v29, %v678_v11  ;;  %v847_v4 = vmul.f32 %v846_v46, %v678_v11 }
 0x17a   : > { %v694_v21 = vadd.f32 %v693_v7, %v690_v38  ;;  %v740_v45 = vadd.f32 %v739_v34, %v724_v39  ;;  %v799_v47 = vadd.f32 %v798_v14, %v785_v40  ;;  %v855_v37 = vadd.f32 %v854_v35, %v841_v44 }
 0x17b   : > { %v692_v48 = vadd.f32 %v691_v9, %v688_v19  ;;  %v732_v49 = vadd.f32 %v731_v15, %v716_v26  ;;  %v792_v52 = vadd.f32 %v791_v42, %v778_v36  ;;  %v848_v53 = vadd.f32 %v847_v4, %v834_v27  ;;  %v684_v3 = vpop.permute.xlu1 %683  ;;  %v682_v54 = vpop.permute.xlu0 %681 }
 0x17c   : > { %v697_v58 = vmul.f32 %v684_v3, %v671_v2  ;;  %v755_v60 = vmul.f32 %v754_v28, %v684_v3  ;;  %v812_v50 = vmul.f32 %v811_v30, %v684_v3  ;;  %v868_v51 = vmul.f32 %v867_v16, %v684_v3 }
 0x17d   : > { %v695_v1 = vmul.f32 %v682_v54, %v1531_v59  ;;  %v747_v12 = vmul.f32 %v746_v55, %v682_v54  ;;  %v805_v43 = vmul.f32 %v804_v0, %v682_v54  ;;  %v861_v29 = vmul.f32 %v860_v57, %v682_v54 }
 0x17e   : > { %v698_v46 = vadd.f32 %v697_v58, %v694_v21  ;;  %v756_v61 = vadd.f32 %v755_v60, %v740_v45  ;;  %v813_v62 = vadd.f32 %v812_v50, %v799_v47  ;;  %v869_v63 = vadd.f32 %v868_v51, %v855_v37 }
 0x17f   : > { %v696_v20 = vadd.f32 %v695_v1, %v692_v48  ;;  %v748_v22 = vadd.f32 %v747_v12, %v732_v49  ;;  %v806_v24 = vadd.f32 %v805_v43, %v792_v52  ;;  %v862_v25 = vadd.f32 %v861_v29, %v848_v53  ;;  %v686_v6 = vpop.permute.xlu0 %685 }
 0x180   : > { %v872_v2 = vrot.slane %v1567_v56, 5  ;;  %v699_v17 = vmul.f32 %v686_v6, %v1567_v56  ;;  %v763_v28 = vmul.f32 %v762_v23, %v686_v6  ;;  %v819_v30 = vmul.f32 %v818_v13, %v686_v6 }
 0x182   : > { %v874_v59 = vsel %vm826_vm1, %v870_v5, %v872_v2  ;;  %v700_v55 = vadd.f32 %v699_v17, %v696_v20  ;;  %v764_v0 = vadd.f32 %v763_v28, %v748_v22  ;;  %v820_v57 = vadd.f32 %v819_v30, %v806_v24 }
 0x183   : > { %v875_v31 = vmul.f32 %v874_v59, %v686_v6 }
 0x184   : > { %v701_v32 = vadd.f32 %v700_v55, %v698_v46  ;;  %v765_v8 = vadd.f32 %v764_v0, %v756_v61  ;;  %v821_v33 = vadd.f32 %v820_v57, %v813_v62 }
 0x185   : > { %v876_v10 = vadd.f32 %v875_v31, %v862_v25 }
 0x186   : > { %v879_v18 = vrot.slane %v765_v8, 4 }
 0x187   : > { %v877_v56 = vadd.f32 %v876_v10, %v869_v63 }
 0x188   : > { %v885_v19 = vsel %vm884_vm2, %v701_v32, %v879_v18 }
 0x189   : > { %v882_v26 = vrot.slane %v877_v56, 4  ;;  %887 = vst [vmem:[%s160_s11] sm:$0xff] %v885_v19 }
 0x18b   : > { %v886_v36 = vsel %vm884_vm2, %v821_v33, %v882_v26 }
 0x18c   : > { %888 = vst [vmem:[%s160_s11 + $0x8] sm:$0xff] %v886_v36 }
 0x18d PF: > { %s12_s9 = sadd.s32 1, %s999_s9  }
 0x18e   : > { %p9_p4 = scmp.ge.s32.totalorder %s12_s9, 4  }
 0x190   :  { %11 = sbr.rel (!%p9_p4) target bundleno = 1 (0x1), region = 61 }

</bundles_post_ra>
